<compile_context>
chip_gen: v5e
topology: v5e:2x2
jax: 0.10.0
libtpu: 0.0.40
codegen_flags: <defaults>
</compile_context>

<pallas_src>
import functools

import jax
import jax.numpy as jnp
from jax.experimental import pallas as pl
from jax.experimental.pallas import tpu as pltpu


# ----------------------------------------------------------------------------
# Fast path kernel: kernel_size == (3, 3), planes flattened to (TB, H*W).
# ----------------------------------------------------------------------------
def _nms3x3_flat_kernel(x_ref, o_ref, *, H, W):
    x = x_ref[...]                        # (TB, L) lane-dense tile
    TB, L = x.shape

    # Separable 8-neighbour max (4 XLU rolls instead of 8, balanced max tree):
    #   c     = max(x[f-1], x[f+1])           same-row, non-centre
    #   h     = max(c, x)                     3-wide row max
    #   neigh = max(h[f-W], h[f+W], c, 0)
    # Flat-roll wraparound / row-seam mixing only touches the outer 1-pixel
    # ring, which is masked off below, so this is exact for 3x3.
    e = pltpu.roll(x, shift=(L - 1) % L, axis=1)   # x[f+1]
    w = pltpu.roll(x, shift=1 % L, axis=1)         # x[f-1]
    c = jnp.maximum(e, w)
    h = jnp.maximum(c, x)
    n = pltpu.roll(h, shift=W % L, axis=1)         # h[f-W]  (row above)
    s = pltpu.roll(h, shift=(L - W) % L, axis=1)   # h[f+W]  (row below)
    # Zeroed centre channel of the torch conv -> the channel max includes 0.
    neigh = jnp.maximum(jnp.maximum(n, s), jnp.maximum(c, jnp.zeros_like(c)))

    # Interior-ring mask computed in-kernel (no extra HBM input stream).
    idx = jax.lax.broadcasted_iota(jnp.int32, (TB, L), 1)
    col = jax.lax.rem(idx, W)
    interior = (idx >= W) & (idx < L - W) & (col >= 1) & (col <= W - 2)

    o_ref[...] = jnp.where((x > neigh) & interior, x, jnp.zeros_like(x))


def _sublane_multiple(dtype) -> int:
    # f32 -> 8 rows/sublane tile, bf16 -> 16, int8/fp8 -> 32 (sublane packing).
    itemsize = jnp.dtype(dtype).itemsize
    return {4: 8, 2: 16, 1: 32}.get(itemsize, 8)


# ~4 MiB per block: 2x(in) + 2x(out) double-buffers ~= 16 MiB, safely inside
# the 32 MiB scoped-VMEM limit requested below (holds on v5e/v6e/v7x alike).
_FLAT_BLOCK_BUDGET = 4 << 20
# Only split the parallel grid (v7x megacore) when blocks stay >= 256 KiB so
# the ~0.35 us per-grid-step overhead remains well amortised.
_MIN_MULTI_STEP_BLOCK = 256 << 10


def _pick_flat_batch(BC: int, plane_bytes: int, sub: int,
                     budget: int = _FLAT_BLOCK_BUDGET):
    """Pick a plane-batch tile: divides BC, sublane-friendly, fits budget."""
    cands = []
    if BC * plane_bytes <= budget:
        cands.append(BC)
    t = sub
    while t < BC:
        if BC % t == 0 and t * plane_bytes <= budget:
            cands.append(t)
        t += sub
    if not cands:
        return None
    # Prefer >=2 grid steps (keeps both v7x TensorCores streaming HBM) when the
    # per-step block is still big enough to amortise launch overhead.
    multi = [t for t in cands
             if BC // t >= 2 and t * plane_bytes >= _MIN_MULTI_STEP_BLOCK]
    if multi:
        return max(multi)
    return max(cands)


def _nms2d_3x3(x):
    B, C, H, W = x.shape
    BC, L = B * C, H * W
    itemsize = jnp.dtype(x.dtype).itemsize
    plane_bytes = L * itemsize
    sub = _sublane_multiple(x.dtype)

    xf = x.reshape(BC, L)        # contiguous reshape, no data movement
    n_rows = BC
    tb = _pick_flat_batch(BC, plane_bytes, sub)
    if tb is None:
        # BC has no lane/sublane-friendly divisor that fits the budget: pad the
        # plane axis with zero planes (far cheaper than the lane-sparse general
        # fallback) and slice the result afterwards.
        tb = (min(BC, _FLAT_BLOCK_BUDGET // max(plane_bytes, 1)) // sub) * sub
        if tb < sub:
            # TODO(synk): spatial (H) tiling with a halo for huge planes.
            return None
        n_rows = -(-BC // tb) * tb
        xf = jnp.pad(xf, ((0, n_rows - BC), (0, 0)))

    kernel = functools.partial(_nms3x3_flat_kernel, H=H, W=W)
    # NOTE: if an xprof trace ever shows DMA gaps between grid steps, sweeping
    # pipeline_mode=pl.Buffered(3) on these specs is a cheap reversible knob.
    out = pl.pallas_call(
        kernel,
        out_shape=jax.ShapeDtypeStruct((n_rows, L), x.dtype),
        grid=(n_rows // tb,),
        in_specs=[pl.BlockSpec((tb, L), lambda i: (i, 0))],
        out_specs=pl.BlockSpec((tb, L), lambda i: (i, 0)),
        compiler_params=pltpu.CompilerParams(
            dimension_semantics=("parallel",),
            vmem_limit_bytes=32 * 1024 * 1024),
        cost_estimate=pl.CostEstimate(
            flops=7 * n_rows * L,
            transcendentals=0,
            bytes_accessed=2 * n_rows * L * itemsize),
    )(xf)
    if n_rows != BC:
        out = out[:BC]
    return out.reshape(B, C, H, W)


# ----------------------------------------------------------------------------
# General path: any odd kernel size; batched padded planes, separable max.
# ----------------------------------------------------------------------------
def _nms_general_kernel(xp_ref, o_ref, *, ky, kx, H, W):
    py, px = ky // 2, kx // 2
    xp = xp_ref[...]                      # (TB, H+2py, W+2px) padded planes
    x = xp[:, py:py + H, px:px + W]       # centre plane (static slice)

    # Separable non-centre window max:
    #   h[r, j] = max_{dx} xp[r, j+dx]                     (kx-1 maxima)
    #   neigh   = max( h over the ky-1 non-centre rows,    (ky-1 maxima)
    #                  non-centre horizontal max, centre row,  (kx-1 maxima)
    #                  0 )   -- zeroed centre channel of the torch conv
    h = xp[:, :, 0:W]
    for ix in range(1, kx):
        h = jnp.maximum(h, xp[:, :, ix:ix + W])

    neigh = jnp.zeros_like(x)
    for iy in range(ky):
        if iy == py:
            continue
        neigh = jnp.maximum(neigh, h[:, iy:iy + H, :])
    for ix in range(kx):
        if ix == px:
            continue
        neigh = jnp.maximum(neigh, xp[:, py:py + H, ix:ix + W])

    o_ref[...] = jnp.where(x > neigh, x, jnp.zeros_like(x))


def _nms2d_general(x, ky, kx):
    B, C, H, W = x.shape
    BC = B * C
    py, px = (ky - 1) // 2, (kx - 1) // 2
    HP, WP = H + 2 * py, W + 2 * px
    itemsize = jnp.dtype(x.dtype).itemsize

    xr = x.reshape(BC, H, W)
    # TODO(synk): fuse the replicate pad into the kernel (clamped shifts) and
    # use a lane-dense flat layout for k > 3 so this fallback also avoids one
    # HBM round trip and sub-128 lane stores; only non-3x3 sizes (and oversized
    # planes) hit this path.
    xp = jnp.pad(xr, ((0, 0), (py, py), (px, px)), mode="edge")

    budget = 2 << 20   # per-block; 2x(in) + 2x(out) double-buffers stay <32MiB
    tb = 1
    for d in range(1, BC + 1):
        if BC % d == 0 and d * HP * WP * itemsize <= budget:
            tb = d

    kernel = functools.partial(_nms_general_kernel, ky=ky, kx=kx, H=H, W=W)
    out = pl.pallas_call(
        kernel,
        out_shape=jax.ShapeDtypeStruct((BC, H, W), x.dtype),
        grid=(BC // tb,),
        in_specs=[pl.BlockSpec((tb, HP, WP), lambda i: (i, 0, 0))],
        out_specs=pl.BlockSpec((tb, H, W), lambda i: (i, 0, 0)),
        compiler_params=pltpu.CompilerParams(
            dimension_semantics=("parallel",),
            vmem_limit_bytes=32 * 1024 * 1024),
        cost_estimate=pl.CostEstimate(
            flops=(2 * (kx - 1) + (ky - 1) + 3) * BC * H * W,
            transcendentals=0,
            bytes_accessed=(BC * HP * WP + BC * H * W) * itemsize),
    )(xp)
    return out.reshape(B, C, H, W)


# ----------------------------------------------------------------------------
# Public wrapper (mirrors NonMaximaSuppression2d.forward, mask_only=False).
# ----------------------------------------------------------------------------
def nms2d(x: jnp.ndarray, kernel_size=(3, 3)) -> jnp.ndarray:
    ky, kx = kernel_size
    if ky % 2 == 0 or kx % 2 == 0:
        raise ValueError("only odd kernel sizes are supported")
    if x.ndim != 4:
        raise ValueError(f"expected 4D NCHW input, got shape {x.shape}")

    if (ky, kx) == (3, 3):
        out = _nms2d_3x3(x)
        if out is not None:
            return out
    return _nms2d_general(x, ky, kx)


# ----------------------------------------------------------------------------
# Pure-JAX reference mirroring the torch forward (eye-based conv).
# ----------------------------------------------------------------------------
def _get_nms_kernel2d(kx: int, ky: int) -> jnp.ndarray:
    numel = ky * kx
    center = numel // 2
    weight = jnp.eye(numel, dtype=jnp.float32)
    weight = weight.at[center, center].set(0.0)
    return weight.reshape(numel, 1, ky, kx)


def nms2d_ref(x: jnp.ndarray, kernel_size=(3, 3)) -> jnp.ndarray:
    ky, kx = kernel_size
    py, px = (ky - 1) // 2, (kx - 1) // 2
    B, C, H, W = x.shape
    xp = jnp.pad(x, ((0, 0), (0, 0), (py, py), (px, px)), mode="edge")
    w = _get_nms_kernel2d(kx, ky).astype(x.dtype)
    xpr = xp.reshape(B * C, 1, H + 2 * py, W + 2 * px)
    conv = jax.lax.conv_general_dilated(
        xpr, w, window_strides=(1, 1), padding="VALID",
        dimension_numbers=("NCHW", "OIHW", "NCHW"),
        precision=jax.lax.Precision.HIGHEST)
    max_nc = conv.reshape(B, C, -1, H, W).max(axis=2)
    mask = x > max_nc
    return x * mask.astype(x.dtype)


if __name__ == "__main__":
    key = jax.random.PRNGKey(0)
    B, C, H, W = 2, 4, 16, 16
    x = jax.random.normal(key, (B, C, H, W), dtype=jnp.float32)

    # 3x3 fast (lane-dense, 4-roll separable) path
    out = jax.block_until_ready(nms2d(x, kernel_size=(3, 3)))
    ref = nms2d_ref(x, kernel_size=(3, 3))
    assert out.shape == (B, C, H, W)
    assert out.dtype == x.dtype
    assert jnp.allclose(out, ref, atol=1e-6, rtol=0.0), "3x3 mismatch vs reference"

    # non-multiple-of-8 plane batch (full-dim block path)
    x2 = jax.random.normal(jax.random.PRNGKey(1), (3, 5, 16, 16), dtype=jnp.float32)
    out2 = jax.block_until_ready(nms2d(x2, kernel_size=(3, 3)))
    ref2 = nms2d_ref(x2, kernel_size=(3, 3))
    assert jnp.allclose(out2, ref2, atol=1e-6, rtol=0.0), "3x3 (BC=15) mismatch"

    # general odd-kernel fallback path
    out5 = jax.block_until_ready(nms2d(x, kernel_size=(5, 5)))
    ref5 = nms2d_ref(x, kernel_size=(5, 5))
    assert jnp.allclose(out5, ref5, atol=1e-6, rtol=0.0), "5x5 mismatch vs reference"

    print("KERNEL_OK")
</pallas_src>

<mosaic_0001>
module attributes {stable_mosaic.version = 11 : i64} {
  func.func @_nms3x3_flat_kernel(%arg0: i32, %arg1: memref<8x256xf32, #tpu.memory_space<vmem>>, %arg2: memref<8x256xf32, #tpu.memory_space<vmem>>) attributes {dimension_semantics = [#tpu.dimension_semantics<parallel>], iteration_bounds = array<i64: 1>, scalar_prefetch = 0 : i64, scratch_operands = 0 : i64, tpu.core_type = #tpu.core_type<tc>, window_params = [{transform_indices = @transform_0, window_bounds = array<i64: 8, 256>}, {transform_indices = @transform_1, window_bounds = array<i64: 8, 256>}]} {
    %c0 = arith.constant 0 : index
    %c0_0 = arith.constant 0 : index
    %0 = vector.load %arg1[%c0, %c0_0] : memref<8x256xf32, #tpu.memory_space<vmem>>, vector<8x256xf32>
    %c255_i32 = arith.constant 255 : i32
    %1 = tpu.dynamic_rotate %0 by %c255_i32 dim 1 : vector<8x256xf32>, i32 -> vector<8x256xf32>
    %c1_i32 = arith.constant 1 : i32
    %2 = tpu.dynamic_rotate %0 by %c1_i32 dim 1 : vector<8x256xf32>, i32 -> vector<8x256xf32>
    %3 = arith.maximumf %1, %2 : vector<8x256xf32>
    %4 = arith.maximumf %3, %0 : vector<8x256xf32>
    %c16_i32 = arith.constant 16 : i32
    %5 = tpu.dynamic_rotate %4 by %c16_i32 dim 1 : vector<8x256xf32>, i32 -> vector<8x256xf32>
    %c240_i32 = arith.constant 240 : i32
    %6 = tpu.dynamic_rotate %4 by %c240_i32 dim 1 : vector<8x256xf32>, i32 -> vector<8x256xf32>
    %7 = arith.maximumf %5, %6 : vector<8x256xf32>
    %cst = arith.constant 0.000000e+00 : f32
    %8 = vector.broadcast %cst : f32 to vector<8x256xf32>
    %9 = arith.maximumf %3, %8 : vector<8x256xf32>
    %10 = arith.maximumf %7, %9 : vector<8x256xf32>
    %11 = tpu.iota {dimensions = array<i32: 1>} : vector<8x256xi32>
    %c16_i32_1 = arith.constant 16 : i32
    %12 = vector.broadcast %c16_i32_1 : i32 to vector<8x256xi32>
    %13 = arith.remsi %11, %12 : vector<8x256xi32>
    %c16_i32_2 = arith.constant 16 : i32
    %14 = vector.broadcast %c16_i32_2 : i32 to vector<8x256xi32>
    %15 = arith.cmpi sge, %11, %14 : vector<8x256xi32>
    %c240_i32_3 = arith.constant 240 : i32
    %16 = vector.broadcast %c240_i32_3 : i32 to vector<8x256xi32>
    %17 = arith.cmpi slt, %11, %16 : vector<8x256xi32>
    %18 = arith.andi %15, %17 : vector<8x256xi1>
    %c1_i32_4 = arith.constant 1 : i32
    %19 = vector.broadcast %c1_i32_4 : i32 to vector<8x256xi32>
    %20 = arith.cmpi sge, %13, %19 : vector<8x256xi32>
    %21 = arith.andi %18, %20 : vector<8x256xi1>
    %c14_i32 = arith.constant 14 : i32
    %22 = vector.broadcast %c14_i32 : i32 to vector<8x256xi32>
    %23 = arith.cmpi sle, %13, %22 : vector<8x256xi32>
    %24 = arith.andi %21, %23 : vector<8x256xi1>
    %25 = arith.cmpf ogt, %0, %10 : vector<8x256xf32>
    %26 = arith.andi %25, %24 : vector<8x256xi1>
    %cst_5 = arith.constant 0.000000e+00 : f32
    %27 = vector.broadcast %cst_5 : f32 to vector<8x256xf32>
    %28 = arith.select %26, %0, %27 : vector<8x256xi1>, vector<8x256xf32>
    %c0_6 = arith.constant 0 : index
    %c0_7 = arith.constant 0 : index
    %29 = vector.load %arg2[%c0_6, %c0_7] : memref<8x256xf32, #tpu.memory_space<vmem>>, vector<8x256xf32>
    tpu.vector_store %arg2[%c0_6, %c0_7], %28 {strides = array<i32>} : memref<8x256xf32, #tpu.memory_space<vmem>>, vector<8x256xf32>,
    return
  }
  func.func @transform_0(%arg0: i32) -> (i32, i32) {
    %c0_i32 = arith.constant 0 : i32
    %c0_i32_0 = arith.constant 0 : i32
    return %arg0, %c0_i32 : i32, i32
  }
  func.func @transform_1(%arg0: i32) -> (i32, i32) {
    %c0_i32 = arith.constant 0 : i32
    %c0_i32_0 = arith.constant 0 : i32
    return %arg0, %c0_i32 : i32, i32
  }
}

</mosaic_0001>

<bundles_post_ra>
// kernel: tpu_custom_call.1
= control target key start
LH: loop header
LB: loop body
LE: loop exit
PB: predicated region body
PF: predicated region fallthrough
CT: control target
= control target key end

     0   :  { %6 = vsyncpa [#allocation3], 0  ;;  %s225_s0 = inlined_call_operand.hbm [shape: f32[8,256], index: 0, kind: input, shape index: {}]   ;;  %s226_s1 = inlined_call_operand.hbm [shape: f32[8,256], index: 1, kind: output, shape index: {}]  }
   0x1   :  { %7 = vsyncpa [#allocation4], 0  ;;  %s13_s8 = sshll.u32 %s225_s0, 4  ;;  %s177_s9 = smov [#allocation2]   ;;  %s14_s8 = int_to_ptr.hbm [resolvable:$true] %s13_s8 }
   0x2   :  { %s15_s10 = sshll.u32 %s177_s9, 4  ;;  %s16_s10 = int_to_ptr.vmem [resolvable:$true] %s15_s10 }
   0x3   :  { %18 = dma.hbm_to_vmem [thread:$0]  %s14_s8, 256, %s16_s10, [#allocation3]  }
   0x4   :  { %173 = dma.done.wait [#allocation3], 256  }
   0x5   :  { %174 = vsyncadd [#allocation3], 4294967040  ;;  %v196_v0 = vld [vmem:[#allocation2] sm:$0xff]  ;;  %s178_s11 = smov 1   ;;  %s179_s12 = smov 127   ;;  %v200_v1 = vld [vmem:[#allocation2 + $0x8] sm:$0xff]  ;;  %v29_v2 = vlaneseq }
   0x6   :  { %34 = vrot.lane.b32.xlu1 %v196_v0, %s178_s11  ;;  %25 = vrot.lane.b32.xlu0 %v196_v0, %s179_s12  ;;  %s180_s0 = smov 112   ;;  %s181_s13 = smov 16  }
   0x7   :  { %v30_v5 = vand.u32 127, %v29_v2  ;;  %s182_s14 = smov [#allocation5]   ;;  %s109_s18 = sshll.u32 %s226_s1, 4  ;;  %s110_s18 = int_to_ptr.hbm [resolvable:$true] %s109_s18 }
   0x8   :  { %s107_s15 = sshll.u32 %s182_s14, 4  ;;  %s108_s15 = int_to_ptr.vmem [resolvable:$true] %s107_s15 }
   0x9   :  { %vm38_vm0 = vcmp.lt.s32.totalorder %v30_v5, 1  ;;  %vm31_vm1 = vcmp.lt.s32.totalorder %v30_v5, 127  ;;  %v65_v17 = vadd.s32 128, %v30_v5  ;;  %v70_v18 = vand.u32 15, %v30_v5 }
   0xa   :  { %vm49_vm2 = vcmp.lt.s32.totalorder %v30_v5, 16  ;;  %vm56_vm3 = vcmp.lt.s32.totalorder %v30_v5, 112  ;;  %vm80_vm4 = vcmp.ge.s32.totalorder %v30_v5, 16 }
   0xb   :  { %v77_v19 = vand.u32 15, %v65_v17  ;;  %vm86_vm5 = vcmp.ge.s32.totalorder %v70_v18, 1  ;;  %vm83_vm6 = vcmp.lt.s32.totalorder %v65_v17, 240  ;;  %vm206_vm8 = vcmp.le.s32.totalorder %v70_v18, 14 }
   0xc   :  { %vm210_vm9 = vmand %vm80_vm4, %vm86_vm5 }
   0xd   :  { %vm87_vm7 = vcmp.ge.s32.totalorder %v77_v19, 1  ;;  %vm91_vm11 = vcmp.le.s32.totalorder %v77_v19, 14  ;;  %vm92_vm12 = vmand %vm210_vm9, %vm206_vm8 }
   0xe   :  { %36 = vrot.lane.b32.xlu1 %v200_v1, %s178_s11  ;;  %27 = vrot.lane.b32.xlu0 %v200_v1, %s179_s12  ;;  %vm89_vm10 = vmand %vm83_vm6, %vm87_vm7 }
   0xf   :  { %vm93_vm13 = vmand %vm89_vm10, %vm91_vm11 }
  0x78   :  { %v35_v3 = vpop.permute.xlu1 %34  ;;  %v26_v4 = vpop.permute.xlu0 %25 }
  0x80   :  { %v37_v6 = vpop.permute.xlu1 %36  ;;  %v28_v7 = vpop.permute.xlu0 %27 }
  0x81   :  { %v39_v8 = vsel %vm38_vm0, %v35_v3, %v37_v6  ;;  %v40_v9 = vsel %vm38_vm0, %v37_v6, %v35_v3  ;;  %v32_v10 = vsel %vm31_vm1, %v26_v4, %v28_v7  ;;  %v33_v11 = vsel %vm31_vm1, %v28_v7, %v26_v4 }
  0x82   :  { %v41_v12 = vmax.f32 %v32_v10, %v40_v9  ;;  %v42_v13 = vmax.f32 %v33_v11, %v39_v8 }
  0x84   :  { %v44_v14 = vmax.f32 %v42_v13, %v200_v1  ;;  %v43_v15 = vmax.f32 %v41_v12, %v196_v0  ;;  %v61_v21 = vmax.f32 %v41_v12, 0.0  ;;  %v62_v30 = vmax.f32 %v42_v13, 0.0 }
  0x86   :  { %54 = vrot.lane.b32.xlu1 %v44_v14, %s180_s0  ;;  %52 = vrot.lane.b32.xlu0 %v43_v15, %s180_s0 }
  0x87   :  { %45 = vrot.lane.b32.xlu2 %v43_v15, %s181_s13 }
  0x8f   :  { %47 = vrot.lane.b32.xlu2 %v44_v14, %s181_s13 }
  0xe1   :  { %v46_v16 = vpop.permute.xlu2 %45 }
  0xe9   :  { %v48_v20 = vpop.permute.xlu2 %47 }
  0xea   :  { %v50_v25 = vsel %vm49_vm2, %v46_v16, %v48_v20  ;;  %v51_v26 = vsel %vm49_vm2, %v48_v20, %v46_v16 }
  0xf8   :  { %v55_v22 = vpop.permute.xlu1 %54  ;;  %v53_v23 = vpop.permute.xlu0 %52 }
  0xf9   :  { %v57_v27 = vsel %vm56_vm3, %v53_v23, %v55_v22  ;;  %v58_v28 = vsel %vm56_vm3, %v55_v22, %v53_v23 }
  0xfa   :  { %v59_v31 = vmax.f32 %v51_v26, %v57_v27  ;;  %v60_v32 = vmax.f32 %v50_v25, %v58_v28 }
  0xfc   :  { %v63_v33 = vmax.f32 %v59_v31, %v61_v21  ;;  %v64_v34 = vmax.f32 %v60_v32, %v62_v30 }
  0xfe   :  { %vm94_vm14 = vcmp.gt.f32.partialorder %v196_v0, %v63_v33  ;;  %vm95_vm15 = vcmp.gt.f32.partialorder %v200_v1, %v64_v34 }
  0xff   :  { %vm96_vm0 = vmand %vm94_vm14, %vm92_vm12 }
 0x100   :  { %vm97_vm1 = vmand %vm95_vm15, %vm93_vm13  ;;  %v98_v35 = vsel %vm96_vm0, %v196_v0, 0.0 }
 0x101   :  { %v99_v36 = vsel %vm97_vm1, %v200_v1, 0.0  ;;  %100 = vst [vmem:[#allocation5] sm:$0xff] %v98_v35 }
 0x102   :  { %101 = vst [vmem:[#allocation5 + $0x8] sm:$0xff] %v99_v36 }
 0x103   :  { %112 = dma.vmem_to_hbm [thread:$0]  %s108_s15, 256, %s110_s18, [#allocation4]  }
 0x104   :  { %175 = dma.done.wait [#allocation4], 256  }
 0x105   :  { %176 = vsyncadd [#allocation4], 4294967040 }
 0x106   :  { %117 = vsyncpa [#allocation3], 1 }
 0x107   :  { %118 = vsyncpa [#allocation4], 1 }

</bundles_post_ra>
